<compile_context>
chip_gen: v7x
topology: tpu7x:2x2x1
jax: 0.10.0
libtpu: 0.0.40
codegen_flags: <defaults>
</compile_context>

<pallas_src>
import jax
import jax.numpy as jnp
from jax import lax
from jax.experimental import pallas as pl
from jax.experimental.pallas import tpu as pltpu

EPS = 1e-5
LANE = 128
MXU_DTYPE = jnp.bfloat16      # MXU operand dtype (f32 accumulation)
STORE_DTYPE = jnp.bfloat16    # inter-stage conv-output storage dtype


def _round_up(x, m):
    return (x + m - 1) // m * m


def _vmem_limit_bytes():
    # Derive from hardware instead of hardcoding: v7x has only 64 MiB of VMEM,
    # v5e/v6e have 128 MiB.  Fall back to a safe 32 MiB if the query fails.
    try:
        cap = int(pltpu.get_tpu_info().vmem_capacity_bytes)
        return max(16 * 1024 * 1024, min(cap // 2, 64 * 1024 * 1024))
    except Exception:
        return 32 * 1024 * 1024


def _pick_row_tile(m):
    """Largest sublane-aligned tile dividing M that still leaves >=2 grid steps."""
    for cand in (2048, 1024, 512, 256, 128, 64, 32, 16, 8):
        if m % cand == 0 and m // cand >= 2:
            return cand
    for cand in (2048, 1024, 512, 256, 128, 64, 32, 16, 8):
        if m % cand == 0:
            return cand
    return m


# --------------------------- Pallas kernel ----------------------------------- #
def _conv_mm_stats_kernel(p_ref, w_ref, y_ref, sum_ref, ssq_ref):
    """One conv tile = one lane-dense MXU matmul (taps folded into K) + BN partials.

    p_ref: (TM, Kp) bf16 patch tile, w_ref: (Kp, Coutp) bf16 folded weights.
    Emits the raw conv output (bf16) and per-tile sum / sum-of-squares (f32)
    for the two-phase global BatchNorm of this stage.
    """
    acc = jnp.dot(p_ref[...], w_ref[...], preferred_element_type=jnp.float32)
    y_ref[...] = acc.astype(y_ref.dtype)
    sum_ref[...] = jnp.sum(acc, axis=0, keepdims=True)[None]
    ssq_ref[...] = jnp.sum(acc * acc, axis=0, keepdims=True)[None]


# --------------------------- pallas_call wrapper ------------------------------ #
def _conv_pass(patches, w_mat):
    """One conv stage: raw conv output (bf16) + per-tile partial BN statistics."""
    M, Kp = patches.shape
    Coutp = w_mat.shape[-1]
    tm = _pick_row_tile(M)
    n_tiles = M // tm

    flops = 2 * M * Kp * Coutp
    bytes_accessed = (patches.size * patches.dtype.itemsize
                      + w_mat.size * w_mat.dtype.itemsize
                      + M * Coutp * jnp.dtype(STORE_DTYPE).itemsize
                      + 2 * n_tiles * Coutp * 4)

    return pl.pallas_call(
        _conv_mm_stats_kernel,
        out_shape=(jax.ShapeDtypeStruct((M, Coutp), STORE_DTYPE),
                   jax.ShapeDtypeStruct((n_tiles, 1, Coutp), jnp.float32),
                   jax.ShapeDtypeStruct((n_tiles, 1, Coutp), jnp.float32)),
        grid=(n_tiles,),
        in_specs=[
            pl.BlockSpec((tm, Kp), lambda i: (i, 0)),
            pl.BlockSpec((Kp, Coutp), lambda i: (0, 0)),
        ],
        out_specs=(
            pl.BlockSpec((tm, Coutp), lambda i: (i, 0)),
            pl.BlockSpec((1, 1, Coutp), lambda i: (i, 0, 0)),
            pl.BlockSpec((1, 1, Coutp), lambda i: (i, 0, 0)),
        ),
        compiler_params=pltpu.CompilerParams(
            dimension_semantics=("parallel",),
            vmem_limit_bytes=_vmem_limit_bytes()),
        cost_estimate=pl.CostEstimate(flops=int(flops), transcendentals=0,
                                      bytes_accessed=int(bytes_accessed)),
    )(patches, w_mat)


# ------------------------------- JAX glue ------------------------------------- #
def _extract_patches(x_nhwc, k_pad):
    """im2col for a 3x3 / pad=1 conv: (N,H,W,C) -> (N*H*W, k_pad) in MXU dtype.

    Column order is (dy, dx, cin), matching w_hwio.reshape(9*Cin, Cout).  With
    tiny real channel counts (9*Cin <= 128) the lane-padded patch tensor is the
    SAME number of bytes as a 128-lane-padded plain input, so this costs no
    extra HBM traffic while turning each conv into a single dense matmul.
    XLA fuses the preceding elementwise math (BN+ReLU, casts) into this gather.
    """
    N, H, W, C = x_nhwc.shape
    xp = jnp.pad(x_nhwc, ((0, 0), (1, 1), (1, 1), (0, 0)))
    taps = [xp[:, dy:dy + H, dx:dx + W, :] for dy in range(3) for dx in range(3)]
    p = jnp.concatenate(taps, axis=-1)                          # (N,H,W,9C)
    p = jnp.pad(p, ((0, 0), (0, 0), (0, 0), (0, k_pad - 9 * C)))
    return p.reshape(N * H * W, k_pad).astype(MXU_DTYPE)


def _interp_matrix(out_size, in_size):
    """Bilinear (align_corners=True) 1-D interpolation matrix (out_size, in_size)."""
    if in_size == 1:
        return jnp.ones((out_size, 1), jnp.float32)
    src = jnp.arange(out_size, dtype=jnp.float32) * (in_size - 1) / (out_size - 1)
    i0 = jnp.clip(jnp.floor(src).astype(jnp.int32), 0, in_size - 2)
    frac = src - i0.astype(jnp.float32)
    oh0 = jax.nn.one_hot(i0, in_size, dtype=jnp.float32)
    oh1 = jax.nn.one_hot(i0 + 1, in_size, dtype=jnp.float32)
    return (1.0 - frac)[:, None] * oh0 + frac[:, None] * oh1


def upsample_pad_concat(x1, x2):
    """x1, x2 are NCHW.  Matches Up.forward's upsample + F.pad + cat semantics."""
    N, C1, H1, W1 = x1.shape
    _, C2, H2, W2 = x2.shape
    Hu, Wu = 2 * H1, 2 * W1
    R = _interp_matrix(Hu, H1)
    Cm = _interp_matrix(Wu, W1)
    x1_up = jnp.einsum("oh,nchw,pw->ncop", R, x1, Cm)
    d_x = H2 - Hu
    d_y = W2 - Wu
    x1_up = jnp.pad(
        x1_up,
        ((0, 0), (0, 0), (d_x // 2, d_x - d_x // 2), (d_y // 2, d_y - d_y // 2)),
    )
    return jnp.concatenate([x2, x1_up], axis=1)     # NCHW, channels = C2 + C1


def _bn_scale_shift(part_sum, part_ssq, gamma, beta, count):
    """Combine per-tile partial stats into BatchNorm (train-mode) scale/shift."""
    tot = jnp.sum(part_sum, axis=(0, 1))            # (C,)
    tot2 = jnp.sum(part_ssq, axis=(0, 1))
    mean = tot / count
    var = jnp.maximum(tot2 / count - mean * mean, 0.0)   # clamp: no NaN from rsqrt
    scale = gamma * lax.rsqrt(var + EPS)
    shift = beta - mean * scale
    return scale, shift                              # (C,), (C,)


def up_forward_pallas(x1, x2, params):
    x = upsample_pad_concat(x1, x2)                 # NCHW f32
    xh = jnp.transpose(x, (0, 2, 3, 1))             # NHWC
    N, H, W, Cin = xh.shape
    Cmid = params["w1"].shape[-1]
    Cout = params["w2"].shape[-1]
    M = N * H * W
    K1 = _round_up(9 * Cin, LANE)                   # folded contraction dims
    K2 = _round_up(9 * Cmid, LANE)
    Cmid_p = _round_up(Cmid, LANE)
    Cout_p = _round_up(Cout, LANE)

    # Folded conv weights: HWIO (3,3,Cin,Cout) -> (9*Cin, Cout), zero-padded to
    # (Kp, Coutp), bf16 MXU operands.  Conv biases b1/b2 are intentionally NOT
    # applied: a bias added before train-mode BatchNorm is exactly cancelled by
    # the mean subtraction.
    w1m = jnp.pad(params["w1"].reshape(9 * Cin, Cmid),
                  ((0, K1 - 9 * Cin), (0, Cmid_p - Cmid))).astype(MXU_DTYPE)
    w2m = jnp.pad(params["w2"].reshape(9 * Cmid, Cout),
                  ((0, K2 - 9 * Cmid), (0, Cout_p - Cout))).astype(MXU_DTYPE)
    g1 = jnp.pad(params["g1"], (0, Cmid_p - Cmid))
    be1 = jnp.pad(params["be1"], (0, Cmid_p - Cmid))
    g2 = jnp.pad(params["g2"], (0, Cout_p - Cout))
    be2 = jnp.pad(params["be2"], (0, Cout_p - Cout))

    # ---- stage 1: conv1 = single K=128 matmul per tile + partial batch stats ----
    p1 = _extract_patches(xh, K1)
    y1_raw, s1, ss1 = _conv_pass(p1, w1m)
    scale1, shift1 = _bn_scale_shift(s1, ss1, g1, be1, M)

    # ---- stage 2: BN1+ReLU1 fused (by XLA) into the stage-2 patch gather, conv2 ----
    y1_act = jnp.maximum(y1_raw.astype(jnp.float32) * scale1 + shift1, 0.0)
    y1_act = y1_act.reshape(N, H, W, Cmid_p)[..., :Cmid]   # drop padded channels
    p2 = _extract_patches(y1_act, K2)
    y2_raw, s2, ss2 = _conv_pass(p2, w2m)
    scale2, shift2 = _bn_scale_shift(s2, ss2, g2, be2, M)

    # ---- stage 3: BN2 + ReLU2 + channel slice + NCHW transpose, all fused by XLA ----
    out = jnp.maximum(y2_raw.astype(jnp.float32) * scale2 + shift2, 0.0)
    out = out.reshape(N, H, W, Cout_p)[..., :Cout]
    return jnp.transpose(out, (0, 3, 1, 2))         # back to NCHW


# --------------------------- pure-JAX reference -------------------------------- #
def _ref_conv_bn_relu(x_nhwc, w_hwio, b, gamma, beta):
    # Conv operands rounded to the same MXU dtype as the kernel (f32 accumulate).
    # The conv bias IS applied here even though the Pallas path drops it: it is
    # exactly cancelled by the train-mode BatchNorm mean subtraction.
    y = lax.conv_general_dilated(
        x_nhwc.astype(MXU_DTYPE), w_hwio.astype(MXU_DTYPE),
        window_strides=(1, 1), padding="SAME",
        dimension_numbers=("NHWC", "HWIO", "NHWC"),
        preferred_element_type=jnp.float32)
    y = y + b
    mean = y.mean(axis=(0, 1, 2), keepdims=True)
    var = ((y - mean) ** 2).mean(axis=(0, 1, 2), keepdims=True)
    y = (y - mean) * lax.rsqrt(var + EPS) * gamma + beta
    return jnp.maximum(y, 0.0)


def up_forward_ref(x1, x2, params):
    x = upsample_pad_concat(x1, x2)
    xh = jnp.transpose(x, (0, 2, 3, 1))
    y1 = _ref_conv_bn_relu(xh, params["w1"], params["b1"], params["g1"], params["be1"])
    y2 = _ref_conv_bn_relu(y1, params["w2"], params["b2"], params["g2"], params["be2"])
    return jnp.transpose(y2, (0, 3, 1, 2))


# ---------------------------------- main --------------------------------------- #
if __name__ == "__main__":
    key = jax.random.PRNGKey(0)
    k1, k2, kw1, kb1, kg1, kB1, kw2, kb2, kg2, kB2 = jax.random.split(key, 10)

    # Up(in_channels=8, out_channels=8): x1 has 4 channels at half resolution,
    # x2 has 4 channels at full resolution -> concat gives 8 = in_channels.
    N, C1, H1, W1 = 2, 4, 8, 8
    C2, H2, W2 = 4, 16, 16
    in_ch = C1 + C2          # 8
    out_ch = 8
    mid_ch = in_ch // 2      # 4

    x1 = jax.random.normal(k1, (N, C1, H1, W1), jnp.float32)
    x2 = jax.random.normal(k2, (N, C2, H2, W2), jnp.float32)

    params = {
        # conv weights stored HWIO: (3, 3, Cin, Cout)
        "w1": 0.1 * jax.random.normal(kw1, (3, 3, in_ch, mid_ch), jnp.float32),
        "b1": 0.1 * jax.random.normal(kb1, (mid_ch,), jnp.float32),
        "g1": 1.0 + 0.1 * jax.random.normal(kg1, (mid_ch,), jnp.float32),
        "be1": 0.1 * jax.random.normal(kB1, (mid_ch,), jnp.float32),
        "w2": 0.1 * jax.random.normal(kw2, (3, 3, mid_ch, out_ch), jnp.float32),
        "b2": 0.1 * jax.random.normal(kb2, (out_ch,), jnp.float32),
        "g2": 1.0 + 0.1 * jax.random.normal(kg2, (out_ch,), jnp.float32),
        "be2": 0.1 * jax.random.normal(kB2, (out_ch,), jnp.float32),
    }

    out = jax.block_until_ready(jax.jit(up_forward_pallas)(x1, x2, params))
    ref = jax.block_until_ready(jax.jit(up_forward_ref)(x1, x2, params))

    assert out.shape == (N, out_ch, H2, W2), out.shape
    err = float(jnp.max(jnp.abs(out - ref)))
    # bf16 inter-stage storage (review-requested) adds ~1e-2 worst-case rounding
    # noise relative to the f32-intermediate reference.
    assert err < 3e-2, err
    print("KERNEL_OK")
</pallas_src>

<mosaic_0001>
module attributes {stable_mosaic.version = 11 : i64} {
  func.func @_conv_mm_stats_kernel(%arg0: i32, %arg1: memref<256x128xbf16, #tpu.memory_space<vmem>>, %arg2: memref<128x128xbf16, #tpu.memory_space<vmem>>, %arg3: memref<256x128xbf16, #tpu.memory_space<vmem>>, %arg4: memref<1x1x128xf32, #tpu.memory_space<vmem>>, %arg5: memref<1x1x128xf32, #tpu.memory_space<vmem>>) attributes {dimension_semantics = [#tpu.dimension_semantics<parallel>], iteration_bounds = array<i64: 2>, scalar_prefetch = 0 : i64, scratch_operands = 0 : i64, tpu.core_type = #tpu.core_type<tc>, window_params = [{transform_indices = @transform_0, window_bounds = array<i64: 256, 128>}, {pipeline_mode = #tpu.pipeline_mode<synchronous>, transform_indices = @transform_1, window_bounds = array<i64: 128, 128>}, {transform_indices = @transform_2, window_bounds = array<i64: 256, 128>}, {transform_indices = @transform_3, window_bounds = array<i64: 1, 1, 128>}, {transform_indices = @transform_4, window_bounds = array<i64: 1, 1, 128>}]} {
    %c0 = arith.constant 0 : index
    %c0_0 = arith.constant 0 : index
    %0 = vector.load %arg1[%c0, %c0_0] : memref<256x128xbf16, #tpu.memory_space<vmem>>, vector<256x128xbf16>
    %c0_1 = arith.constant 0 : index
    %c0_2 = arith.constant 0 : index
    %1 = vector.load %arg2[%c0_1, %c0_2] : memref<128x128xbf16, #tpu.memory_space<vmem>>, vector<128x128xbf16>
    %cst = arith.constant dense<0.000000e+00> : vector<256x128xf32>
    %2 = tpu.matmul %0, %1, %cst {dimension_numbers = #tpu.dot_dimension_numbers<[1], [0], [0], [1], [0, 0, 1, 1], [], []>} : vector<256x128xbf16>, vector<128x128xbf16>, vector<256x128xf32> -> vector<256x128xf32>
    %3 = arith.truncf %2 : vector<256x128xf32> to vector<256x128xbf16>
    %c0_3 = arith.constant 0 : index
    %c0_4 = arith.constant 0 : index
    %4 = vector.load %arg3[%c0_3, %c0_4] : memref<256x128xbf16, #tpu.memory_space<vmem>>, vector<256x128xbf16>
    tpu.vector_store %arg3[%c0_3, %c0_4], %3 {strides = array<i32>} : memref<256x128xbf16, #tpu.memory_space<vmem>>, vector<256x128xbf16>,
    %cst_5 = arith.constant dense<0.000000e+00> : vector<128xf32>
    %5 = vector.multi_reduction <add>, %2, %cst_5 [0] : vector<256x128xf32> to vector<128xf32>
    %6 = vector.shape_cast %5 : vector<128xf32> to vector<1x128xf32>
    %7 = vector.shape_cast %6 : vector<1x128xf32> to vector<1x1x128xf32>
    %c0_6 = arith.constant 0 : index
    %c0_7 = arith.constant 0 : index
    %c0_8 = arith.constant 0 : index
    %8 = vector.load %arg4[%c0_6, %c0_7, %c0_8] : memref<1x1x128xf32, #tpu.memory_space<vmem>>, vector<1x1x128xf32>
    tpu.vector_store %arg4[%c0_6, %c0_7, %c0_8], %7 {strides = array<i32>} : memref<1x1x128xf32, #tpu.memory_space<vmem>>, vector<1x1x128xf32>,
    %9 = arith.mulf %2, %2 : vector<256x128xf32>
    %cst_9 = arith.constant dense<0.000000e+00> : vector<128xf32>
    %10 = vector.multi_reduction <add>, %9, %cst_9 [0] : vector<256x128xf32> to vector<128xf32>
    %11 = vector.shape_cast %10 : vector<128xf32> to vector<1x128xf32>
    %12 = vector.shape_cast %11 : vector<1x128xf32> to vector<1x1x128xf32>
    %c0_10 = arith.constant 0 : index
    %c0_11 = arith.constant 0 : index
    %c0_12 = arith.constant 0 : index
    %13 = vector.load %arg5[%c0_10, %c0_11, %c0_12] : memref<1x1x128xf32, #tpu.memory_space<vmem>>, vector<1x1x128xf32>
    tpu.vector_store %arg5[%c0_10, %c0_11, %c0_12], %12 {strides = array<i32>} : memref<1x1x128xf32, #tpu.memory_space<vmem>>, vector<1x1x128xf32>,
    return
  }
  func.func @transform_0(%arg0: i32) -> (i32, i32) {
    %c0_i32 = arith.constant 0 : i32
    %c0_i32_0 = arith.constant 0 : i32
    return %arg0, %c0_i32 : i32, i32
  }
  func.func @transform_1(%arg0: i32) -> (i32, i32) {
    %c0_i32 = arith.constant 0 : i32
    %c0_i32_0 = arith.constant 0 : i32
    %c0_i32_1 = arith.constant 0 : i32
    return %c0_i32, %c0_i32_0 : i32, i32
  }
  func.func @transform_2(%arg0: i32) -> (i32, i32) {
    %c0_i32 = arith.constant 0 : i32
    %c0_i32_0 = arith.constant 0 : i32
    return %arg0, %c0_i32 : i32, i32
  }
  func.func @transform_3(%arg0: i32) -> (i32, i32, i32) {
    %c0_i32 = arith.constant 0 : i32
    %c0_i32_0 = arith.constant 0 : i32
    %c0_i32_1 = arith.constant 0 : i32
    return %arg0, %c0_i32, %c0_i32_0 : i32, i32, i32
  }
  func.func @transform_4(%arg0: i32) -> (i32, i32, i32) {
    %c0_i32 = arith.constant 0 : i32
    %c0_i32_0 = arith.constant 0 : i32
    %c0_i32_1 = arith.constant 0 : i32
    return %arg0, %c0_i32, %c0_i32_0 : i32, i32, i32
  }
}

</mosaic_0001>

<bundles_post_ra>
// kernel: up_forward_pallas.2
= control target key start
LH: loop header
LB: loop body
LE: loop exit
PB: predicated region body
PF: predicated region fallthrough
CT: control target
= control target key end

     0   :  { %s1293_s15 = smov 0   ;;  %s1472_s0 = inlined_call_operand.vmem [shape: bf16[512,128], index: 0, kind: input, shape index: {}]   ;;  %s1473_s1 = inlined_call_operand.vmem [shape: bf16[128,128], index: 1, kind: input, shape index: {}]   ;;  %s1474_s2 = inlined_call_operand.vmem [shape: bf16[512,128], index: 2, kind: output, shape index: {0}]   ;;  %s1475_s3 = inlined_call_operand.vmem [shape: f32[2,1,128], index: 3, kind: output, shape index: {1}]   ;;  %s1476_s4 = inlined_call_operand.vmem [shape: f32[2,1,128], index: 4, kind: output, shape index: {2}]  }
   0x1 LB: > { %s1299_s16 = sadd.s32 4294967295, %s1266_s15   ;;  %p950_p0 = scmp.ge.s32.totalorder %s1266_s15, 1  ;;  %s1266_s15 = sphi %s1293_s15, %s15_s15  }
   0x2   : > { %p168_p1 = scmp.lt.s32.totalorder %s1266_s15, 3 }
   0x4   : > { %p169_p2 = pnand %p950_p0, %p168_p1 }
   0x5   : > { %v1236_v0 = vld [vmem:[%s1473_s1] sm:$0xff] (!%p169_p2)   ;;  %s951_s19 = sshll.u32 (!%p169_p2), %s1299_s16, 5  ;;  %v1237_v1 = vld [vmem:[%s1473_s1 + $0x8] sm:$0xff] (!%p169_p2)   ;;  %v1238_v2 = vld [vmem:[%s1473_s1 + $0x10] sm:$0xff] (!%p169_p2)   ;;  %p212_p4 = scmp.lt.s32.totalorder (!%p169_p2), %s1299_s16, 1 }
   0x6   : > { %172 = sbr.rel (%p169_p2) target bundleno = 330 (0x14a), region = 28  ;;  %p201_p3 = scmp.lt.s32.totalorder (!%p169_p2), %s951_s19, 63  ;;  %1164 = vmatprep.subr.bf16.mxu0 (!%p169_p2), %v1236_v0  ;;  %1212 = vmatprep.subr.bf16.mxu1 (!%p169_p2), %v1236_v0  ;;  %v1239_v3 = vld [vmem:[%s1473_s1 + $0x18] sm:$0xff] (!%p169_p2)   ;;  %v1240_v5 = vld [vmem:[%s1473_s1 + $0x20] sm:$0xff] (!%p169_p2)   ;;  %v1241_v6 = vld [vmem:[%s1473_s1 + $0x28] sm:$0xff] (!%p169_p2)  }
   0x7   : > { %1165 = vmatpush3.bf16.msra.mxu0 (!%p169_p2), %v1236_v0  ;;  %1220 = vmatpush3.bf16.msra.mxu1 (!%p169_p2), %v1236_v0  ;;  %v1242_v8 = vld [vmem:[%s1473_s1 + $0x30] sm:$0xff] (!%p169_p2)   ;;  %v1243_v9 = vld [vmem:[%s1473_s1 + $0x38] sm:$0xff] (!%p169_p2)  }
   0x8   : > { %1166 = vmatprep.subr.bf16.mxu0 (!%p169_p2), %v1237_v1  ;;  %1213 = vmatprep.subr.bf16.mxu1 (!%p169_p2), %v1237_v1 }
   0xb   : > { %1167 = vmatpush3.bf16.msra.mxu0 (!%p169_p2), %v1237_v1  ;;  %1221 = vmatpush3.bf16.msra.mxu1 (!%p169_p2), %v1237_v1 }
   0xc   : > { %1168 = vmatprep.subr.bf16.mxu0 (!%p169_p2), %v1238_v2  ;;  %1214 = vmatprep.subr.bf16.mxu1 (!%p169_p2), %v1238_v2 }
   0xd   : > { %s1478_s19 = smov (!%p201_p3, %s951_s19), 63  ;;  %s1480_s16 = smov (!%p212_p4, %s1299_s16), 1 }
   0xe   : > { %s952_s24 = sshll.u32 %s1478_s19, 2  ;;  %s214_s19 = scalar_lea.vmem %s1475_s3, %s1480_s16 }
   0xf   : > { %s1321_s27 = scalar_lea.vmem %s1472_s0, %s952_s24  ;;  %1169 = vmatpush3.bf16.msra.mxu0 %v1238_v2  ;;  %1222 = vmatpush3.bf16.msra.mxu1 %v1238_v2  ;;  %s1363_s14 = scalar_lea.vmem %s1474_s2, %s952_s24 }
  0x10   : > { %v1244_v4 = vld [vmem:[%s1321_s27] sm:$0xff]   ;;  %1170 = vmatprep.subr.bf16.mxu0 %v1239_v3  ;;  %1215 = vmatprep.subr.bf16.mxu1 %v1239_v3  ;;  %v1245_v10 = vld [vmem:[%s1321_s27 + $0x8] sm:$0xff]   ;;  %v1246_v12 = vld [vmem:[%s1321_s27 + $0x10] sm:$0xff]   ;;  %s217_s22 = scalar_lea.vmem %s1476_s4, %s1480_s16 }
  0x11   : > { %1180 = vmatprep.mubr.bf16.mxu0 %v1244_v4  ;;  %v1252_v7 = vld [vmem:[%s1321_s27 + $0x40] sm:$0xff]   ;;  %v1253_v11 = vld [vmem:[%s1321_s27 + $0x48] sm:$0xff]   ;;  %v1254_v13 = vld [vmem:[%s1321_s27 + $0x50] sm:$0xff]  }
  0x12   : > { %1196 = vmatprep.mubr.bf16.mxu1 %v1252_v7  ;;  %v1247_v14 = vld [vmem:[%s1321_s27 + $0x18] sm:$0xff]   ;;  %v1248_v16 = vld [vmem:[%s1321_s27 + $0x20] sm:$0xff]   ;;  %v1249_v18 = vld [vmem:[%s1321_s27 + $0x28] sm:$0xff]  }
  0x13   : > { %1171 = vmatpush3.bf16.msra.mxu0 %v1239_v3  ;;  %1223 = vmatpush3.bf16.msra.mxu1 %v1239_v3  ;;  %v1255_v15 = vld [vmem:[%s1321_s27 + $0x58] sm:$0xff]   ;;  %v1256_v17 = vld [vmem:[%s1321_s27 + $0x60] sm:$0xff]   ;;  %v1257_v19 = vld [vmem:[%s1321_s27 + $0x68] sm:$0xff]  }
  0x14   : > { %1172 = vmatprep.subr.bf16.mxu0 %v1240_v5  ;;  %1216 = vmatprep.subr.bf16.mxu1 %v1240_v5  ;;  %v1250_v20 = vld [vmem:[%s1321_s27 + $0x30] sm:$0xff]   ;;  %v1251_v22 = vld [vmem:[%s1321_s27 + $0x38] sm:$0xff]  }
  0x15   : > { %v1258_v21 = vld [vmem:[%s1321_s27 + $0x70] sm:$0xff]   ;;  %v1259_v23 = vld [vmem:[%s1321_s27 + $0x78] sm:$0xff]  }
  0x17   : > { %1173 = vmatpush3.bf16.msra.mxu0 %v1240_v5  ;;  %1224 = vmatpush3.bf16.msra.mxu1 %v1240_v5 }
  0x18   : > { %1174 = vmatprep.subr.bf16.mxu0 %v1241_v6  ;;  %1217 = vmatprep.subr.bf16.mxu1 %v1241_v6 }
  0x1b   : > { %1175 = vmatpush3.bf16.msra.mxu0 %v1241_v6  ;;  %1225 = vmatpush3.bf16.msra.mxu1 %v1241_v6 }
  0x1c   : > { %1176 = vmatprep.subr.bf16.mxu0 %v1242_v8  ;;  %1218 = vmatprep.subr.bf16.mxu1 %v1242_v8 }
  0x1f   : > { %1177 = vmatpush3.bf16.msra.mxu0 %v1242_v8  ;;  %1226 = vmatpush3.bf16.msra.mxu1 %v1242_v8 }
  0x20   : > { %1178 = vmatprep.subr.bf16.mxu0 %v1243_v9  ;;  %1219 = vmatprep.subr.bf16.mxu1 %v1243_v9 }
  0x23   : > { %1179 = vmatpush3.bf16.msra.mxu0 %v1243_v9  ;;  %1227 = vmatpush3.bf16.msra.mxu1 %v1243_v9 }
  0x26   : > { %1181 = vmatmul.mubr.bf16.vlgmr.msra.gmra.mrb[0].mxu0 %v1245_v10  ;;  %1197 = vmatmul.mubr.bf16.vlgmr.msra.gmra.mrb[0].mxu1 %v1253_v11 }
  0x27   : > { %1184 = vmatprep.mubr.bf16.mxu0 %v1246_v12  ;;  %1200 = vmatprep.mubr.bf16.mxu1 %v1254_v13 }
  0x2e   : > { %1185 = vmatmul.mubr.bf16.gmra.mrb[4].mxu0 %v1247_v14  ;;  %1201 = vmatmul.mubr.bf16.gmra.mrb[4].mxu1 %v1255_v15 }
  0x2f   : > { %1188 = vmatprep.mubr.bf16.mxu0 %v1248_v16  ;;  %1204 = vmatprep.mubr.bf16.mxu1 %v1256_v17 }
  0x36   : > { %1189 = vmatmul.mubr.bf16.gmra.mrb[8].mxu0 %v1249_v18  ;;  %1205 = vmatmul.mubr.bf16.gmra.mrb[8].mxu1 %v1257_v19 }
  0x37   : > { %1192 = vmatprep.mubr.bf16.mxu0 %v1250_v20  ;;  %1208 = vmatprep.mubr.bf16.mxu1 %v1258_v21 }
  0x3e   : > { %1193 = vmatmul.mubr.bf16.gmra.mrb[12].mxu0 %v1251_v22  ;;  %1209 = vmatmul.mubr.bf16.gmra.mrb[12].mxu1 %v1259_v23 }
  0xf9   : > { %v1182_v24 = vpop.f32.mrb[0].mxu0  ;;  %v1354_v25 = vpop.f32.mrb[0].mxu1 }
  0xfa   : > { %v445_v26 = vpop.f32.mrb[1].mxu0  ;;  %v1356_v27 = vpop.f32.mrb[1].mxu1  ;;  %v772_v39 = vmul.f32 %v1182_v24, %v1182_v24 }
  0xfb   : > { %v1183_v28 = vpop.f32.mrb[2].mxu0  ;;  %v1365_v29 = vpop.f32.mrb[2].mxu1  ;;  %v770_v30 = vmul.f32 %v445_v26, %v445_v26 }
  0xfc   : > { %v1053_v31 = vpack.c.bf16 %v1183_v28, %v1182_v24  ;;  %v448_v32 = vpop.f32.mrb[3].mxu0  ;;  %v1093_v33 = vpack.c.bf16 %v1365_v29, %v1354_v25  ;;  %v1369_v34 = vpop.f32.mrb[3].mxu1  ;;  %v773_v42 = vmul.f32 %v1183_v28, %v1183_v28 }
  0xfd   : > { %v1048_v35 = vpack.c.bf16 %v448_v32, %v445_v26  ;;  %v732_v36 = vadd.f32 %v448_v32, %v445_v26  ;;  %v771_v37 = vmul.f32 %v448_v32, %v448_v32  ;;  %v1088_v38 = vpack.c.bf16 %v1369_v34, %v1356_v27 }
  0xfe   : > { %1125 = vst [vmem:[%s1363_s14 + $0x8] sm:$0xff] %v1053_v31   ;;  %1133 = vst [vmem:[%s1363_s14 + $0x48] sm:$0xff] %v1093_v33  }
  0xff   : > { %1049 = vst [vmem:[%s1363_s14] sm:$0xff] %v1048_v35   ;;  %v733_v40 = vadd.f32 %v1182_v24, %v732_v36  ;;  %v802_v41 = vadd.f32 %v771_v37, %v770_v30  ;;  %1132 = vst [vmem:[%s1363_s14 + $0x40] sm:$0xff] %v1088_v38  }
 0x101   : > { %v803_v43 = vadd.f32 %v802_v41, %v772_v39  ;;  %v1186_v44 = vpop.f32.mrb[4].mxu0  ;;  %v734_v45 = vadd.f32 %v1183_v28, %v733_v40  ;;  %v1377_v46 = vpop.f32.mrb[4].mxu1 }
 0x102   : > { %v461_v47 = vpop.f32.mrb[5].mxu0  ;;  %v1379_v48 = vpop.f32.mrb[5].mxu1  ;;  %v776_v63 = vmul.f32 %v1186_v44, %v1186_v44 }
 0x103   : > { %v735_v49 = vadd.f32 %v734_v45, %v461_v47  ;;  %v774_v50 = vmul.f32 %v461_v47, %v461_v47  ;;  %v804_v51 = vadd.f32 %v803_v43, %v773_v42  ;;  %v1187_v52 = vpop.f32.mrb[6].mxu0  ;;  %v1381_v53 = vpop.f32.mrb[6].mxu1 }
 0x104   : > { %v1063_v54 = vpack.c.bf16 %v1187_v52, %v1186_v44  ;;  %v464_v55 = vpop.f32.mrb[7].mxu0  ;;  %v1103_v56 = vpack.c.bf16 %v1381_v53, %v1377_v46  ;;  %v1385_v57 = vpop.f32.mrb[7].mxu1  ;;  %v777_v2 = vmul.f32 %v1187_v52, %v1187_v52 }
 0x105   : > { %v805_v58 = vadd.f32 %v804_v51, %v774_v50  ;;  %v1058_v59 = vpack.c.bf16 %v464_v55, %v461_v47  ;;  %v736_v60 = vadd.f32 %v735_v49, %v464_v55  ;;  %v775_v61 = vmul.f32 %v464_v55, %v464_v55 }
 0x106   : > { %1127 = vst [vmem:[%s1363_s14 + $0x18] sm:$0xff] %v1063_v54   ;;  %1135 = vst [vmem:[%s1363_s14 + $0x58] sm:$0xff] %v1103_v56   ;;  %v1098_v62 = vpack.c.bf16 %v1385_v57, %v1379_v48 }
 0x107   : > { %1126 = vst [vmem:[%s1363_s14 + $0x10] sm:$0xff] %v1058_v59   ;;  %v737_v0 = vadd.f32 %v1186_v44, %v736_v60  ;;  %v806_v1 = vadd.f32 %v805_v58, %v775_v61  ;;  %v786_v61 = vmul.f32 %v1356_v27, %v1356_v27 }
 0x108   : > { %1134 = vst [vmem:[%s1363_s14 + $0x50] sm:$0xff] %v1098_v62  }
 0x109   : > { %v807_v3 = vadd.f32 %v806_v1, %v776_v63  ;;  %v1190_v4 = vpop.f32.mrb[8].mxu0  ;;  %v738_v5 = vadd.f32 %v1187_v52, %v737_v0  ;;  %v1393_v6 = vpop.f32.mrb[8].mxu1 }
 0x10a   : > { %v477_v7 = vpop.f32.mrb[9].mxu0  ;;  %v1395_v8 = vpop.f32.mrb[9].mxu1  ;;  %v780_v23 = vmul.f32 %v1190_v4, %v1190_v4 }
 0x10b   : > { %v739_v9 = vadd.f32 %v738_v5, %v477_v7  ;;  %v778_v10 = vmul.f32 %v477_v7, %v477_v7  ;;  %v808_v11 = vadd.f32 %v807_v3, %v777_v2  ;;  %v1191_v12 = vpop.f32.mrb[10].mxu0  ;;  %v1397_v13 = vpop.f32.mrb[10].mxu1  ;;  %v787_v2 = vmul.f32 %v1369_v34, %v1369_v34 }
 0x10c   : > { %v1073_v14 = vpack.c.bf16 %v1191_v12, %v1190_v4  ;;  %v480_v15 = vpop.f32.mrb[11].mxu0  ;;  %v1113_v16 = vpack.c.bf16 %v1397_v13, %v1393_v6  ;;  %v1401_v17 = vpop.f32.mrb[11].mxu1  ;;  %v781_v28 = vmul.f32 %v1191_v12, %v1191_v12  ;;  %v788_v3 = vmul.f32 %v1354_v25, %v1354_v25 }
 0x10d   : > { %v809_v18 = vadd.f32 %v808_v11, %v778_v10  ;;  %v1068_v19 = vpack.c.bf16 %v480_v15, %v477_v7  ;;  %v740_v20 = vadd.f32 %v739_v9, %v480_v15  ;;  %v779_v21 = vmul.f32 %v480_v15, %v480_v15 }
 0x10e   : > { %1129 = vst [vmem:[%s1363_s14 + $0x28] sm:$0xff] %v1073_v14   ;;  %1137 = vst [vmem:[%s1363_s14 + $0x68] sm:$0xff] %v1113_v16   ;;  %v1108_v22 = vpack.c.bf16 %v1401_v17, %v1395_v8  ;;  %v789_v7 = vmul.f32 %v1365_v29, %v1365_v29  ;;  %v791_v15 = vmul.f32 %v1385_v57, %v1385_v57 }
 0x10f   : > { %1128 = vst [vmem:[%s1363_s14 + $0x20] sm:$0xff] %v1068_v19   ;;  %v741_v24 = vadd.f32 %v1190_v4, %v740_v20  ;;  %v810_v26 = vadd.f32 %v809_v18, %v779_v21 }
 0x110   : > { %1136 = vst [vmem:[%s1363_s14 + $0x60] sm:$0xff] %v1108_v22  }
 0x111   : > { %v811_v30 = vadd.f32 %v810_v26, %v780_v23  ;;  %v1194_v31 = vpop.f32.mrb[12].mxu0  ;;  %v742_v32 = vadd.f32 %v1191_v12, %v741_v24  ;;  %v1409_v33 = vpop.f32.mrb[12].mxu1  ;;  %v795_v24 = vmul.f32 %v1401_v17, %v1401_v17 }
 0x112   : > { %v493_v35 = vpop.f32.mrb[13].mxu0  ;;  %v557_v36 = vpop.f32.mrb[13].mxu1  ;;  %v784_v54 = vmul.f32 %v1194_v31, %v1194_v31 }
 0x113   : > { %v743_v37 = vadd.f32 %v742_v32, %v493_v35  ;;  %v782_v38 = vmul.f32 %v493_v35, %v493_v35  ;;  %v812_v39 = vadd.f32 %v811_v30, %v781_v28  ;;  %v1195_v40 = vpop.f32.mrb[14].mxu0  ;;  %v1411_v41 = vpop.f32.mrb[14].mxu1 }
 0x114   : > { %v1083_v42 = vpack.c.bf16 %v1195_v40, %v1194_v31  ;;  %v496_v43 = vpop.f32.mrb[15].mxu0  ;;  %v1123_v44 = vpack.c.bf16 %v1411_v41, %v1409_v33  ;;  %v560_v45 = vpop.f32.mrb[15].mxu1  ;;  %v785_v58 = vmul.f32 %v1195_v40, %v1195_v40 }
 0x115   : > { %v813_v47 = vadd.f32 %v812_v39, %v782_v38  ;;  %v1078_v49 = vpack.c.bf16 %v496_v43, %v493_v35  ;;  %v744_v50 = vadd.f32 %v743_v37, %v496_v43  ;;  %v783_v51 = vmul.f32 %v496_v43, %v496_v43 }
 0x116   : > { %1131 = vst [vmem:[%s1363_s14 + $0x38] sm:$0xff] %v1083_v42   ;;  %1139 = vst [vmem:[%s1363_s14 + $0x78] sm:$0xff] %v1123_v44   ;;  %v1118_v52 = vpack.c.bf16 %v560_v45, %v557_v36  ;;  %v800_v39 = vmul.f32 %v1409_v33, %v1409_v33  ;;  %v801_v42 = vmul.f32 %v1411_v41, %v1411_v41 }
 0x117   : > { %1130 = vst [vmem:[%s1363_s14 + $0x30] sm:$0xff] %v1078_v49   ;;  %v745_v55 = vadd.f32 %v1194_v31, %v744_v50  ;;  %v814_v56 = vadd.f32 %v813_v47, %v783_v51  ;;  %v798_v31 = vmul.f32 %v557_v36, %v557_v36 }
 0x118   : > { %1138 = vst [vmem:[%s1363_s14 + $0x70] sm:$0xff] %v1118_v52  }
 0x119   : > { %v815_v59 = vadd.f32 %v814_v56, %v784_v54  ;;  %v746_v60 = vadd.f32 %v1195_v40, %v745_v55 }
 0x11b   : > { %v747_v62 = vadd.f32 %v746_v60, %v1356_v27  ;;  %v816_v63 = vadd.f32 %v815_v59, %v785_v58  ;;  %v790_v27 = vmul.f32 %v1379_v48, %v1379_v48 }
 0x11d   : > { %v817_v0 = vadd.f32 %v816_v63, %v786_v61  ;;  %v748_v1 = vadd.f32 %v747_v62, %v1369_v34 }
 0x11f   : > { %v749_v4 = vadd.f32 %v1354_v25, %v748_v1  ;;  %v818_v5 = vadd.f32 %v817_v0, %v787_v2  ;;  %v792_v25 = vmul.f32 %v1377_v46, %v1377_v46 }
 0x121   : > { %v819_v9 = vadd.f32 %v818_v5, %v788_v3  ;;  %v750_v10 = vadd.f32 %v1365_v29, %v749_v4  ;;  %v793_v29 = vmul.f32 %v1381_v53, %v1381_v53 }
 0x123   : > { %v751_v11 = vadd.f32 %v750_v10, %v1379_v48  ;;  %v820_v12 = vadd.f32 %v819_v9, %v789_v7  ;;  %v794_v48 = vmul.f32 %v1395_v8, %v1395_v8 }
 0x125   : > { %v821_v14 = vadd.f32 %v820_v12, %v790_v27  ;;  %v752_v34 = vadd.f32 %v751_v11, %v1385_v57 }
 0x127   : > { %v753_v16 = vadd.f32 %v1377_v46, %v752_v34  ;;  %v822_v18 = vadd.f32 %v821_v14, %v791_v15  ;;  %v796_v46 = vmul.f32 %v1393_v6, %v1393_v6 }
 0x129   : > { %v823_v19 = vadd.f32 %v822_v18, %v792_v25  ;;  %v754_v20 = vadd.f32 %v1381_v53, %v753_v16  ;;  %v797_v53 = vmul.f32 %v1397_v13, %v1397_v13 }
 0x12b   : > { %v755_v21 = vadd.f32 %v754_v20, %v1395_v8  ;;  %v824_v22 = vadd.f32 %v823_v19, %v793_v29 }
 0x12d   : > { %v825_v23 = vadd.f32 %v824_v22, %v794_v48  ;;  %v756_v57 = vadd.f32 %v755_v21, %v1401_v17  ;;  %v799_v17 = vmul.f32 %v560_v45, %v560_v45 }
 0x12f   : > { %v757_v26 = vadd.f32 %v1393_v6, %v756_v57  ;;  %v826_v28 = vadd.f32 %v825_v23, %v795_v24 }
 0x131   : > { %v827_v30 = vadd.f32 %v826_v28, %v796_v46  ;;  %v758_v8 = vadd.f32 %v1397_v13, %v757_v26 }
 0x133   : > { %v759_v32 = vadd.f32 %v758_v8, %v557_v36  ;;  %v828_v35 = vadd.f32 %v827_v30, %v797_v53 }
 0x135   : > { %v829_v37 = vadd.f32 %v828_v35, %v798_v31  ;;  %v760_v38 = vadd.f32 %v759_v32, %v560_v45 }
 0x137   : > { %v761_v6 = vadd.f32 %v1409_v33, %v760_v38  ;;  %v830_v40 = vadd.f32 %v829_v37, %v799_v17 }
 0x139   : > { %v762_v43 = vadd.f32 %v1411_v41, %v761_v6  ;;  %v831_v44 = vadd.f32 %v830_v40, %v800_v39 }
 0x13b   : > { %v763_v13 = vrot.slane %v762_v43, 4  ;;  %v832_v47 = vadd.f32 %v831_v44, %v801_v42 }
 0x13d   : > { %v764_v36 = vadd.f32 %v763_v13, %v762_v43  ;;  %v833_v49 = vrot.slane %v832_v47, 4 }
 0x13f   : > { %v765_v50 = vrot.slane %v764_v36, 2  ;;  %v834_v51 = vadd.f32 %v833_v49, %v832_v47 }
 0x141   : > { %v766_v45 = vadd.f32 %v765_v50, %v764_v36  ;;  %v835_v52 = vrot.slane %v834_v51, 2 }
 0x143   : > { %v767_v54 = vrot.slane %v766_v45, 1  ;;  %v836_v55 = vadd.f32 %v835_v52, %v834_v51 }
 0x145   : > { %v768_v33 = vadd.f32 %v767_v54, %v766_v45  ;;  %v837_v56 = vrot.slane %v836_v55, 1 }
 0x147   : > { %769 = vst [vmem:[%s214_s19] sm:$0x1] %v768_v33  ;;  %v838_v41 = vadd.f32 %v837_v56, %v836_v55 }
 0x149   : > { %839 = vst [vmem:[%s217_s22] sm:$0x1] %v838_v41 }
 0x14a PF: > { %s15_s15 = sadd.s32 1, %s1266_s15  }
 0x14b   : > { %p12_p5 = scmp.ge.s32.totalorder %s15_s15, 4  }
 0x14d   :  { %14 = sbr.rel (!%p12_p5) target bundleno = 1 (0x1), region = 82 }

</bundles_post_ra>
